<compile_context>
chip_gen: v5e
topology: v5e:2x2
jax: 0.10.0
libtpu: 0.0.40
codegen_flags: <defaults>
</compile_context>

<pallas_src>
import functools
import math

import jax
import jax.numpy as jnp
from jax import lax
from jax.experimental import pallas as pl
from jax.experimental.pallas import tpu as pltpu

LANE = 128
SUBLANE = 8


def _round_up(x: int, m: int) -> int:
    return ((x + m - 1) // m) * m


# ----------------------------------------------------------------------------
# Fused kernel: h = x; for each layer: h = act(h @ W_l + b_l); o = h
# ----------------------------------------------------------------------------
def _fused_mlp_kernel(*refs, n_layers: int, final_activation: bool):
    # refs = (x_ref, w0_ref, b0_ref, w1_ref, b1_ref, ..., o_ref)
    x_ref = refs[0]
    o_ref = refs[-1]
    half = jnp.float32(0.5)
    inv_sqrt2 = jnp.float32(1.0 / math.sqrt(2.0))

    h = x_ref[...].astype(jnp.float32)
    for l in range(n_layers):
        w = refs[1 + 2 * l][...]
        b = refs[2 + 2 * l][...]
        h = jnp.dot(h, w, preferred_element_type=jnp.float32) + b
        if (l < n_layers - 1) or final_activation:
            # Exact erf-GELU (matches torch.nn.GELU default), constants folded.
            h = h * (half + half * lax.erf(h * inv_sqrt2))
    o_ref[...] = h.astype(o_ref.dtype)


# ----------------------------------------------------------------------------
# Parameters: init mimics torch.nn.Linear default, stored pre-transposed (in,out)
# ----------------------------------------------------------------------------
def init_mlp_params(key, in_channel, out_channels):
    """U(-1/sqrt(in), 1/sqrt(in)) init; weights stored as (in, out)."""
    params = []
    c_in = in_channel
    for c_out in out_channels:
        key, kw, kb = jax.random.split(key, 3)
        bound = 1.0 / math.sqrt(c_in)
        w = jax.random.uniform(kw, (c_in, c_out), jnp.float32, -bound, bound)
        b = jax.random.uniform(kb, (c_out,), jnp.float32, -bound, bound)
        params.append((w, b))
        c_in = c_out
    return params


def prepare_mlp_params(params):
    """One-time prep:
      * biases -> (1, N)
      * intermediate hidden widths zero-padded to a 128-lane multiple (and the
        next layer's weight rows padded to match) so in-kernel activations are
        lane-dense; zero columns stay zero through GELU and contribute nothing.
      * the FINAL layer keeps its true width so the single HBM store is as
        narrow as possible (minimal write traffic)."""
    prepared = []
    n_layers = len(params)
    prev_extra = 0  # zero rows to prepend-match from the previous padded layer
    for idx, (w, b) in enumerate(params):
        if prev_extra:
            w = jnp.pad(w, ((0, prev_extra), (0, 0)))
        if idx < n_layers - 1:
            n_out = w.shape[1]
            extra = _round_up(n_out, LANE) - n_out
            if extra:
                w = jnp.pad(w, ((0, 0), (0, extra)))
                b = jnp.pad(b, (0, extra))
            prev_extra = extra
        else:
            prev_extra = 0
        prepared.append((w, b.reshape(1, -1)))
    out_channel = params[-1][0].shape[1]
    return prepared, out_channel


# ----------------------------------------------------------------------------
# Forward: one pallas_call, grid over row tiles only (no wrapper-side copies)
# ----------------------------------------------------------------------------
def mlp_forward(x, prepared_params, out_channel, *, final_activation=False,
                tm_max=1024):
    """x: (..., in_channel). Returns (..., out_channel)."""
    lead_shape = x.shape[:-1]
    k0 = x.shape[-1]
    m = math.prod(lead_shape) if lead_shape else 1
    x2d = x.reshape(m, k0)  # metadata-only reshape, no HBM copy

    # Row tile: big enough to amortize per-step overhead, never larger than the
    # sublane-rounded token count; ensure >= 2 grid steps when possible so both
    # TensorCores (v7x) get work. Ragged tails are handled by Pallas edge
    # blocks (padded reads / clipped writes), not by wrapper-side jnp.pad.
    tm = min(tm_max, _round_up(max(m, 1), SUBLANE))
    if m >= 2 * SUBLANE:
        tm = min(tm, _round_up(pl.cdiv(m, 2), SUBLANE))
    grid_m = pl.cdiv(max(m, 1), tm)

    n_layers = len(prepared_params)
    n_out = prepared_params[-1][0].shape[1]
    assert n_out == out_channel, "last layer must keep its true output width"

    in_specs = [pl.BlockSpec((tm, k0), lambda i: (i, 0))]  # x row tile
    flat_args = [x2d]
    for (w, b) in prepared_params:
        in_specs.append(pl.BlockSpec(w.shape, lambda i: (0, 0)))  # full weight
        in_specs.append(pl.BlockSpec(b.shape, lambda i: (0, 0)))  # (1, N) bias
        flat_args.append(w)
        flat_args.append(b)

    # --- VMEM scaling guard -------------------------------------------------
    # Full weights stay resident (and BlockSpec-buffered) in VMEM. Fine at
    # these sizes; if hidden dims grow (~2K f32 per layer already ~16 MiB),
    # raise the scoped limit and eventually switch to K/N-tiled weights.
    bpe = 4  # f32
    weight_bytes = sum(w.size * bpe + b.size * bpe for (w, b) in prepared_params)
    max_width = max(w.shape[1] for (w, _) in prepared_params)
    io_tile_bytes = tm * (k0 + n_out) * bpe
    vmem_est = 2 * io_tile_bytes + 2 * weight_bytes + 2 * tm * max_width * bpe
    compiler_kwargs = dict(dimension_semantics=("parallel",))
    if vmem_est > (12 << 20):
        # TODO(synk): beyond ~16 MiB of weights, tile K/N with a pl.when-init
        # accumulator instead of holding full weights resident in VMEM.
        compiler_kwargs["vmem_limit_bytes"] = min(int(vmem_est * 3 // 2), 100 << 20)

    kernel = functools.partial(
        _fused_mlp_kernel, n_layers=n_layers, final_activation=final_activation
    )

    out = pl.pallas_call(
        kernel,
        out_shape=jax.ShapeDtypeStruct((m, n_out), x.dtype),
        grid_spec=pltpu.PrefetchScalarGridSpec(
            num_scalar_prefetch=0,
            grid=(grid_m,),
            in_specs=in_specs,
            out_specs=pl.BlockSpec((tm, n_out), lambda i: (i, 0)),
        ),
        compiler_params=pltpu.CompilerParams(**compiler_kwargs),
    )(*flat_args)

    return out.reshape(*lead_shape, out_channel)


# ----------------------------------------------------------------------------
# Pure-JAX reference (uses the raw, unpadded (in,out) params)
# ----------------------------------------------------------------------------
def mlp_reference(x, params, *, final_activation=False):
    h = x
    n_layers = len(params)
    for idx, (w, b) in enumerate(params):
        h = h @ w + b
        if (idx < n_layers - 1) or final_activation:
            h = jax.nn.gelu(h, approximate=False)
    return h


if __name__ == "__main__":
    key = jax.random.PRNGKey(0)
    in_channel = 32
    out_channels = [64, 32, 16]

    k_in, k_in2, k_in3, k_params = jax.random.split(key, 4)
    params = init_mlp_params(k_params, in_channel, out_channels)
    prepared, out_dim = prepare_mlp_params(params)

    # Case 1: (batch=2, seq=8, in_channel=32) -> 16 tokens, grid of 2 row tiles.
    x = jax.random.normal(k_in, (2, 8, in_channel), jnp.float32)
    out = jax.block_until_ready(mlp_forward(x, prepared, out_dim))
    ref = mlp_reference(x, params)
    assert out.shape == (2, 8, out_channels[-1])
    assert jnp.allclose(out, ref, atol=1e-4, rtol=1e-4), "mismatch vs reference"

    # Case 2: ragged token count (3*5 = 15 tokens) -> single partial edge block.
    x2 = jax.random.normal(k_in2, (3, 5, in_channel), jnp.float32)
    out2 = jax.block_until_ready(
        mlp_forward(x2, prepared, out_dim, final_activation=True)
    )
    ref2 = mlp_reference(x2, params, final_activation=True)
    assert out2.shape == (3, 5, out_channels[-1])
    assert jnp.allclose(out2, ref2, atol=1e-4, rtol=1e-4), "mismatch (ragged)"

    # Case 3: larger ragged M (4*65 = 260 tokens) -> 2 tiles, last one partial.
    x3 = jax.random.normal(k_in3, (4, 65, in_channel), jnp.float32)
    out3 = jax.block_until_ready(mlp_forward(x3, prepared, out_dim))
    ref3 = mlp_reference(x3, params)
    assert out3.shape == (4, 65, out_channels[-1])
    assert jnp.allclose(out3, ref3, atol=1e-4, rtol=1e-4), "mismatch (edge tile)"

    print("KERNEL_OK")
</pallas_src>

<mosaic_0001>
module attributes {stable_mosaic.version = 11 : i64} {
  func.func @_fused_mlp_kernel(%arg0: i32, %arg1: memref<8x32xf32, #tpu.memory_space<vmem>>, %arg2: memref<32x128xf32, #tpu.memory_space<vmem>>, %arg3: memref<1x128xf32, #tpu.memory_space<vmem>>, %arg4: memref<128x128xf32, #tpu.memory_space<vmem>>, %arg5: memref<1x128xf32, #tpu.memory_space<vmem>>, %arg6: memref<128x16xf32, #tpu.memory_space<vmem>>, %arg7: memref<1x16xf32, #tpu.memory_space<vmem>>, %arg8: memref<8x16xf32, #tpu.memory_space<vmem>>) attributes {dimension_semantics = [#tpu.dimension_semantics<parallel>], iteration_bounds = array<i64: 2>, scalar_prefetch = 0 : i64, scratch_operands = 0 : i64, tpu.core_type = #tpu.core_type<tc>, window_params = [{transform_indices = @transform_0, window_bounds = array<i64: 8, 32>}, {pipeline_mode = #tpu.pipeline_mode<synchronous>, transform_indices = @transform_1, window_bounds = array<i64: 32, 128>}, {pipeline_mode = #tpu.pipeline_mode<synchronous>, transform_indices = @transform_2, window_bounds = array<i64: 1, 128>}, {pipeline_mode = #tpu.pipeline_mode<synchronous>, transform_indices = @transform_3, window_bounds = array<i64: 128, 128>}, {pipeline_mode = #tpu.pipeline_mode<synchronous>, transform_indices = @transform_4, window_bounds = array<i64: 1, 128>}, {pipeline_mode = #tpu.pipeline_mode<synchronous>, transform_indices = @transform_5, window_bounds = array<i64: 128, 16>}, {pipeline_mode = #tpu.pipeline_mode<synchronous>, transform_indices = @transform_6, window_bounds = array<i64: 1, 16>}, {transform_indices = @transform_7, window_bounds = array<i64: 8, 16>}]} {
    %c0 = arith.constant 0 : index
    %c0_0 = arith.constant 0 : index
    %0 = vector.load %arg1[%c0, %c0_0] : memref<8x32xf32, #tpu.memory_space<vmem>>, vector<8x32xf32>
    %c0_1 = arith.constant 0 : index
    %c0_2 = arith.constant 0 : index
    %1 = vector.load %arg2[%c0_1, %c0_2] : memref<32x128xf32, #tpu.memory_space<vmem>>, vector<32x128xf32>
    %c0_3 = arith.constant 0 : index
    %c0_4 = arith.constant 0 : index
    %2 = vector.load %arg3[%c0_3, %c0_4] : memref<1x128xf32, #tpu.memory_space<vmem>>, vector<1x128xf32>
    %cst = arith.constant dense<0.000000e+00> : vector<8x128xf32>
    %3 = tpu.matmul %0, %1, %cst {dimension_numbers = #tpu.dot_dimension_numbers<[1], [0], [0], [1], [0, 0, 1, 1], [], []>} : vector<8x32xf32>, vector<32x128xf32>, vector<8x128xf32> -> vector<8x128xf32>
    %4 = vector.broadcast %2 : vector<1x128xf32> to vector<8x128xf32>
    %5 = arith.addf %3, %4 : vector<8x128xf32>
    %cst_5 = arith.constant 0.707106769 : f32
    %6 = vector.broadcast %cst_5 : f32 to vector<8x128xf32>
    %7 = arith.mulf %5, %6 : vector<8x128xf32>
    %8 = math.erf %7 : vector<8x128xf32>
    %cst_6 = arith.constant 5.000000e-01 : f32
    %9 = vector.broadcast %cst_6 : f32 to vector<8x128xf32>
    %10 = arith.mulf %9, %8 : vector<8x128xf32>
    %cst_7 = arith.constant 5.000000e-01 : f32
    %11 = vector.broadcast %cst_7 : f32 to vector<8x128xf32>
    %12 = arith.addf %11, %10 : vector<8x128xf32>
    %13 = arith.mulf %5, %12 : vector<8x128xf32>
    %c0_8 = arith.constant 0 : index
    %c0_9 = arith.constant 0 : index
    %14 = vector.load %arg4[%c0_8, %c0_9] : memref<128x128xf32, #tpu.memory_space<vmem>>, vector<128x128xf32>
    %c0_10 = arith.constant 0 : index
    %c0_11 = arith.constant 0 : index
    %15 = vector.load %arg5[%c0_10, %c0_11] : memref<1x128xf32, #tpu.memory_space<vmem>>, vector<1x128xf32>
    %cst_12 = arith.constant dense<0.000000e+00> : vector<8x128xf32>
    %16 = tpu.matmul %13, %14, %cst_12 {dimension_numbers = #tpu.dot_dimension_numbers<[1], [0], [0], [1], [0, 0, 1, 1], [], []>} : vector<8x128xf32>, vector<128x128xf32>, vector<8x128xf32> -> vector<8x128xf32>
    %17 = vector.broadcast %15 : vector<1x128xf32> to vector<8x128xf32>
    %18 = arith.addf %16, %17 : vector<8x128xf32>
    %cst_13 = arith.constant 0.707106769 : f32
    %19 = vector.broadcast %cst_13 : f32 to vector<8x128xf32>
    %20 = arith.mulf %18, %19 : vector<8x128xf32>
    %21 = math.erf %20 : vector<8x128xf32>
    %cst_14 = arith.constant 5.000000e-01 : f32
    %22 = vector.broadcast %cst_14 : f32 to vector<8x128xf32>
    %23 = arith.mulf %22, %21 : vector<8x128xf32>
    %cst_15 = arith.constant 5.000000e-01 : f32
    %24 = vector.broadcast %cst_15 : f32 to vector<8x128xf32>
    %25 = arith.addf %24, %23 : vector<8x128xf32>
    %26 = arith.mulf %18, %25 : vector<8x128xf32>
    %c0_16 = arith.constant 0 : index
    %c0_17 = arith.constant 0 : index
    %27 = vector.load %arg6[%c0_16, %c0_17] : memref<128x16xf32, #tpu.memory_space<vmem>>, vector<128x16xf32>
    %c0_18 = arith.constant 0 : index
    %c0_19 = arith.constant 0 : index
    %28 = vector.load %arg7[%c0_18, %c0_19] : memref<1x16xf32, #tpu.memory_space<vmem>>, vector<1x16xf32>
    %cst_20 = arith.constant dense<0.000000e+00> : vector<8x16xf32>
    %29 = tpu.matmul %26, %27, %cst_20 {dimension_numbers = #tpu.dot_dimension_numbers<[1], [0], [0], [1], [0, 0, 1, 1], [], []>} : vector<8x128xf32>, vector<128x16xf32>, vector<8x16xf32> -> vector<8x16xf32>
    %30 = vector.broadcast %28 : vector<1x16xf32> to vector<8x16xf32>
    %31 = arith.addf %29, %30 : vector<8x16xf32>
    %c0_21 = arith.constant 0 : index
    %c0_22 = arith.constant 0 : index
    %32 = vector.load %arg8[%c0_21, %c0_22] : memref<8x16xf32, #tpu.memory_space<vmem>>, vector<8x16xf32>
    tpu.vector_store %arg8[%c0_21, %c0_22], %31 {strides = array<i32>} : memref<8x16xf32, #tpu.memory_space<vmem>>, vector<8x16xf32>,
    return
  }
  func.func @transform_0(%arg0: i32) -> (i32, i32) {
    %c0_i32 = arith.constant 0 : i32
    %c0_i32_0 = arith.constant 0 : i32
    return %arg0, %c0_i32 : i32, i32
  }
  func.func @transform_1(%arg0: i32) -> (i32, i32) {
    %c0_i32 = arith.constant 0 : i32
    %c0_i32_0 = arith.constant 0 : i32
    %c0_i32_1 = arith.constant 0 : i32
    return %c0_i32, %c0_i32_0 : i32, i32
  }
  func.func @transform_2(%arg0: i32) -> (i32, i32) {
    %c0_i32 = arith.constant 0 : i32
    %c0_i32_0 = arith.constant 0 : i32
    %c0_i32_1 = arith.constant 0 : i32
    return %c0_i32, %c0_i32_0 : i32, i32
  }
  func.func @transform_3(%arg0: i32) -> (i32, i32) {
    %c0_i32 = arith.constant 0 : i32
    %c0_i32_0 = arith.constant 0 : i32
    %c0_i32_1 = arith.constant 0 : i32
    return %c0_i32, %c0_i32_0 : i32, i32
  }
  func.func @transform_4(%arg0: i32) -> (i32, i32) {
    %c0_i32 = arith.constant 0 : i32
    %c0_i32_0 = arith.constant 0 : i32
    %c0_i32_1 = arith.constant 0 : i32
    return %c0_i32, %c0_i32_0 : i32, i32
  }
  func.func @transform_5(%arg0: i32) -> (i32, i32) {
    %c0_i32 = arith.constant 0 : i32
    %c0_i32_0 = arith.constant 0 : i32
    %c0_i32_1 = arith.constant 0 : i32
    return %c0_i32, %c0_i32_0 : i32, i32
  }
  func.func @transform_6(%arg0: i32) -> (i32, i32) {
    %c0_i32 = arith.constant 0 : i32
    %c0_i32_0 = arith.constant 0 : i32
    %c0_i32_1 = arith.constant 0 : i32
    return %c0_i32, %c0_i32_0 : i32, i32
  }
  func.func @transform_7(%arg0: i32) -> (i32, i32) {
    %c0_i32 = arith.constant 0 : i32
    %c0_i32_0 = arith.constant 0 : i32
    return %arg0, %c0_i32 : i32, i32
  }
}

</mosaic_0001>

<bundles_post_ra>
// kernel: tpu_custom_call.1
= control target key start
LH: loop header
LB: loop body
LE: loop exit
PB: predicated region body
PF: predicated region fallthrough
CT: control target
= control target key end

     0   :  { %12 = vsyncpa [#allocation3], 0  ;;  %s1004_s0 = inlined_call_operand.vmem [shape: f32[16,32], index: 0, kind: input, shape index: {}]   ;;  %s1005_s1 = inlined_call_operand.hbm [shape: f32[32,128], index: 1, kind: input, shape index: {}]   ;;  %s1006_s2 = inlined_call_operand.vmem [shape: f32[1,128], index: 2, kind: input, shape index: {}]   ;;  %s1007_s3 = inlined_call_operand.vmem [shape: f32[128,128], index: 3, kind: input, shape index: {}]   ;;  %s1008_s4 = inlined_call_operand.vmem [shape: f32[1,128], index: 4, kind: input, shape index: {}]   ;;  %s1009_s5 = inlined_call_operand.vmem [shape: f32[128,16], index: 5, kind: input, shape index: {}]   ;;  %s1010_s6 = inlined_call_operand.vmem [shape: f32[1,16], index: 6, kind: input, shape index: {}]   ;;  %s1011_s7 = inlined_call_operand.hbm [shape: f32[16,16], index: 7, kind: output, shape index: {}]  }
   0x1   :  { %13 = vsyncpa [#allocation4], 0 }
   0x2   :  { %15 = vsyncpa [#allocation4 + $0x1], 0  ;;  %s796_s24 = smov 0   ;;  %s798_s25 = smov 0  }
   0x3   :  { %s800_s26 = smov 0   ;;  %s802_s27 = smov 0  }
   0x4 LB: > { %s817_s28 = sadd.s32 4294967295, %s751_s27   ;;  %s581_s29 = sadd.s32 4294967294, %s751_s27   ;;  %s751_s27 = sphi %s802_s27, %s1017_s27   ;;  %s747_s26 = sphi %s800_s26, %s1016_s26   ;;  %s743_s25 = sphi %s798_s25, %s1015_s25   ;;  %s739_s24 = sphi %s796_s24, %s1014_s24  }
   0x5   : > { %s821_s30 = sadd.s32 1, %s751_s27   ;;  %s180_s8 = sadd.s32 1, %s747_s26 }
   0x6   : > { %s177_s9 = ssub.s32 %s751_s27, %s821_s30  ;;  %p190_p0 = scmp.ne.s32.totalorder %s747_s26, %s743_s25 }
   0x7   : > { %p178_p1 = scmp.eq.s32.totalorder %s177_s9, 0  ;;  %p191_p2 = scmp.eq.s32.totalorder %s817_s28, 1 }
   0x8   : > { %p196_p3 = scmp.ne.s32.totalorder %s743_s25, %s739_s24  ;;  %p197_p4 = scmp.eq.s32.totalorder %s581_s29, 1 }
   0x9   : > { %s832_s10 = scalar_select %p178_p1, %s747_s26, %s180_s8  }
   0xa   : > { %p834_p5 = por %p191_p2, %p190_p0  ;;  %p838_p6 = por %p197_p4, %p196_p3 }
   0xb   : > { %p582_p7 = scmp.ge.s32.totalorder %s751_s27, 1  ;;  %p204_p8 = scmp.lt.s32.totalorder %s751_s27, 3 }
   0xc   : > { %p610_p9 = scmp.eq.s32.totalorder %s817_s28, 0  ;;  %s215_s15 = sshll.u32 %s1005_s1, 4  ;;  %s216_s15 = int_to_ptr.hbm [resolvable:$true] %s215_s15 }
   0xd   : > { %p205_p10 = pnand %p582_p7, %p204_p8  ;;  %s753_s16 = smov [#allocation2]  }
   0xe   : > { %s217_s17 = sshll.u32 %s753_s16, 4  ;;  %s754_s18 = smov 128   ;;  %s218_s17 = int_to_ptr.vmem [resolvable:$true] %s217_s17 }
   0xf   : > { %p602_p11 = pneg %p205_p10  ;;  %s755_s19 = smov 8  }
  0x10   : > { %255 = sbr.rel (%p205_p10) target bundleno = 529 (0x211), region = 48 }
  0x11   : > { %p603_p12 = pnand %p610_p9, %p602_p11 }
  0x13   : > { %605 = dma.hbm_to_vmem [thread:$0]  (!%p603_p12), %s216_s15, 512, %s218_s17, [#allocation3], %s754_s18, %s754_s18, %s755_s19  }
  0x15   : > { %730 = dma.done.wait (%p610_p9), [#allocation3], 512  }
  0x16   : > { %732 = vsyncadd (%p610_p9), [#allocation3], 4294966784  ;;  %p287_p13 = scmp.lt.s32.totalorder %s817_s28, 1  ;;  %v295_v0 = vld [vmem:[#allocation2 + $0x18] sm:$0xff]  ;;  %v294_v1 = vld [vmem:[#allocation2 + $0x10] sm:$0xff]  ;;  %vm300_vm0 = vcmask 261120  }
  0x17   : > { %316 = vmatpush.msra.mxu0 %v295_v0  ;;  %v293_v2 = vld [vmem:[#allocation2 + $0x8] sm:$0xff]  ;;  %v292_v3 = vld [vmem:[#allocation2] sm:$0xff]  ;;  %v383_v5 = vld [vmem:[%s1007_s3 + $0x78] sm:$0xff]  ;;  %s284_s23 = sand.u32 1, %s743_s25   ;;  %s593_s8 = sshll.u32 %s817_s28, 3  ;;  %vm492_vm9 = vcmask 130048  }
  0x18   : > { %s288_s20 = scalar_select %p287_p13, %s817_s28, 1  ;;  %388 = vmatpush.msra.mxu1 %v383_v5  ;;  %v382_v6 = vld [vmem:[%s1007_s3 + $0x70] sm:$0xff]  ;;  %v381_v7 = vld [vmem:[%s1007_s3 + $0x68] sm:$0xff]  ;;  %v648_v8 = vld [vmem:[%s1006_s2] ss:$0 sm:$0xff] }
  0x19   : > { %317 = vmatpush.msra.mxu0 %v294_v1  ;;  %v380_v9 = vld [vmem:[%s1007_s3 + $0x60] sm:$0xff]  ;;  %v379_v10 = vld [vmem:[%s1007_s3 + $0x58] sm:$0xff]  ;;  %v378_v12 = vld [vmem:[%s1007_s3 + $0x50] sm:$0xff]  ;;  %s505_s14 = scalar_lea.hbm %s1011_s7, %s593_s8 }
  0x1a   : > { %s588_s21 = sshll.u32 %s288_s20, 3  ;;  %389 = vmatpush.msra.mxu1 %v382_v6  ;;  %v377_v14 = vld [vmem:[%s1007_s3 + $0x48] sm:$0xff]  ;;  %v376_v16 = vld [vmem:[%s1007_s3 + $0x40] sm:$0xff]  ;;  %v375_v18 = vld [vmem:[%s1007_s3 + $0x38] sm:$0xff]  ;;  %s509_s19 = sshll.u32 %s505_s14, 4  ;;  %s510_s19 = int_to_ptr.hbm [resolvable:$true] %s509_s19 }
  0x1b   : > { %s290_s29 = scalar_lea.vmem %s1004_s0, %s588_s21  ;;  %318 = vmatpush.msra.mxu0 %v293_v2  ;;  %v374_v20 = vld [vmem:[%s1007_s3 + $0x30] sm:$0xff]  ;;  %v373_v23 = vld [vmem:[%s1007_s3 + $0x28] sm:$0xff]  ;;  %v372_v26 = vld [vmem:[%s1007_s3 + $0x20] sm:$0xff]  ;;  %s495_s20 = scalar_lea.sflag [#allocation4], %s284_s23 }
  0x1c   : > { %v291_v4 = vld [vmem:[%s290_s29] sm:$0xff]  ;;  %390 = vmatpush.msra.mxu1 %v381_v7  ;;  %v371_v29 = vld [vmem:[%s1007_s3 + $0x18] sm:$0xff]  ;;  %v370_v32 = vld [vmem:[%s1007_s3 + $0x10] sm:$0xff]  ;;  %s587_s29 = sshll.u32 %s284_s23, 3  ;;  %s699_s28 = sshra.s32 %s510_s19, 4  ;;  %s700_s28 = int_to_ptr.hbm [resolvable:$true] %s699_s28 }
  0x1d   : > { %319 = vmatpush.msra.mxu0 %v292_v3  ;;  %v369_v34 = vld [vmem:[%s1007_s3 + $0x8] sm:$0xff]  ;;  %v368_v37 = vld [vmem:[%s1007_s3] sm:$0xff]  ;;  %v467_v63 = vld [vmem:[%s1009_s5 + $0x78] sm:$0xff]  ;;  %s286_s17 = scalar_lea.vmem [#allocation5], %s587_s29  ;;  %s701_s21 = scalar_lea.hbm %s700_s28, 8 }
  0x1e   : > { %589 = vmatmul.msk.f32.vlgmr.msra.gmra.mxu0 %vm300_vm0, %v291_v4  ;;  %391 = vmatpush.msra.mxu1 %v380_v9  ;;  %v466_v0 = vld [vmem:[%s1009_s5 + $0x70] sm:$0xff]  ;;  %v649_v1 = vld [vmem:[%s1008_s4] ss:$0 sm:$0xff]  ;;  %v465_v2 = vld [vmem:[%s1009_s5 + $0x68] sm:$0xff]  ;;  %s507_s18 = sshll.u32 %s286_s17, 4  ;;  %p702_p0 = scmp.ne.s32.totalorder %s700_s28, %s701_s21  ;;  %s508_s18 = int_to_ptr.vmem [resolvable:$true] %s507_s18 }
  0x1f   : > { %472 = vmatpush.msra.mxu2 %v467_v63  ;;  %v464_v3 = vld [vmem:[%s1009_s5 + $0x60] sm:$0xff]  ;;  %v463_v4 = vld [vmem:[%s1009_s5 + $0x58] sm:$0xff]  ;;  %v462_v7 = vld [vmem:[%s1009_s5 + $0x50] sm:$0xff]  ;;  %s705_s29 = scalar_lea.hbm %s1011_s7, 16  ;;  %p706_p3 = scmp.lt.s32.totalorder %s700_s28, %s1011_s7 }
  0x20   : > { %392 = vmatpush.msra.mxu1 %v379_v10  ;;  %v461_v9 = vld [vmem:[%s1009_s5 + $0x48] sm:$0xff]  ;;  %p703_p1 = pnand %p702_p0, %p834_p5  ;;  %p707_p4 = scmp.lt.s32.totalorder %s705_s29, %s701_s21 }
  0x21   : > { %473 = vmatpush.msra.mxu2 %v466_v0 }
  0x22   : > { %393 = vmatpush.msra.mxu1 %v378_v12  ;;  %p704_p2 = pneg %p703_p1  ;;  %p708_p7 = por %p707_p4, %p706_p3 }
  0x23   : > { %474 = vmatpush.msra.mxu2 %v465_v2 }
  0x24   : > { %394 = vmatpush.msra.mxu1 %v377_v14  ;;  %p709_p8 = pnand %p708_p7, %p704_p2 }
  0x25   : > { %475 = vmatpush.msra.mxu2 %v464_v3 }
  0x26   : > { %395 = vmatpush.msra.mxu1 %v376_v16 }
  0x27   : > { %476 = vmatpush.msra.mxu2 %v463_v4 }
  0x28   : > { %396 = vmatpush.msra.mxu1 %v375_v18  ;;  %v457_v18 = vld [vmem:[%s1009_s5 + $0x28] sm:$0xff] }
  0x29   : > { %477 = vmatpush.msra.mxu2 %v462_v7 }
  0x2a   : > { %397 = vmatpush.msra.mxu1 %v374_v20 }
  0x2b   : > { %478 = vmatpush.msra.mxu2 %v461_v9 }
  0x2c   : > { %398 = vmatpush.msra.mxu1 %v373_v23  ;;  %v455_v23 = vld [vmem:[%s1009_s5 + $0x18] sm:$0xff] }
  0x2e   : > { %399 = vmatpush.msra.mxu1 %v372_v26  ;;  %v454_v26 = vld [vmem:[%s1009_s5 + $0x10] sm:$0xff] }
  0x30   : > { %400 = vmatpush.msra.mxu1 %v371_v29 }
  0x32   : > { %401 = vmatpush.msra.mxu1 %v370_v32 }
  0x34   : > { %402 = vmatpush.msra.mxu1 %v369_v34 }
  0x36   : > { %403 = vmatpush.msra.mxu1 %v368_v37 }
  0x9b   : > { %v321_v11 = vpop.f32.mrf.mxu0 }
  0x9c   : > { %v880_v13 = vadd.f32 %v648_v8, %v321_v11  ;;  %v460_v11 = vld [vmem:[%s1009_s5 + $0x40] sm:$0xff] }
  0x9d   : > { %479 = vmatpush.msra.mxu2 %v460_v11 }
  0x9e   : > { %v324_v15 = vmul.f32 0.70710677, %v880_v13 }
  0xa0   : > { %v325_v17 = vmul.f32 %v324_v15, %v324_v15 }
  0xa2   : > { %v326_v19 = vmin.f32 %v325_v17, 16.0 }
  0xa4   : > { %v327_v21 = vmul.f32 2.1237322e-06, %v326_v19  ;;  %v338_v22 = vmul.f32 3.8918573e-05, %v326_v19 }
  0xa6   : > { %v328_v24 = vadd.f32 0.00028619796, %v327_v21  ;;  %v339_v25 = vadd.f32 0.001143296, %v338_v22  ;;  %v456_v21 = vld [vmem:[%s1009_s5 + $0x20] sm:$0xff] }
  0xa8   : > { %v329_v27 = vmul.f32 %v328_v24, %v326_v19  ;;  %v340_v28 = vmul.f32 %v339_v25, %v326_v19 }
  0xaa   : > { %v341_v30 = vadd.f32 0.014752088, %v340_v28  ;;  %v330_v31 = vadd.f32 0.0036580483, %v329_v27  ;;  %v453_v28 = vld [vmem:[%s1009_s5 + $0x8] sm:$0xff] }
  0xac   : > { %v342_v33 = vmul.f32 %v341_v30, %v326_v19  ;;  %v331_v36 = vmul.f32 %v330_v31, %v326_v19  ;;  %v452_v31 = vld [vmem:[%s1009_s5] sm:$0xff] }
  0xae   : > { %v343_v35 = vadd.f32 0.112945676, %v342_v33  ;;  %v332_v40 = vadd.f32 0.05243302, %v331_v36 }
  0xb0   : > { %v344_v38 = vmul.f32 %v343_v35, %v326_v19  ;;  %v333_v43 = vmul.f32 %v332_v40, %v326_v19 }
  0xb2   : > { %v345_v39 = vadd.f32 0.4994258, %v344_v38  ;;  %v334_v44 = vadd.f32 0.18741608, %v333_v43 }
  0xb4   : > { %v346_v41 = vmul.f32 %v345_v39, %v326_v19  ;;  %v335_v46 = vmul.f32 %v334_v44, %v326_v19 }
  0xb6   : > { %v347_v42 = vadd.f32 1.0, %v346_v41  ;;  %v336_v50 = vadd.f32 1.1283791, %v335_v46 }
  0xb8   : > { %651 = vrcp.f32 %v347_v42  ;;  %v359_v49 = vand.u32 2147483648, %v347_v42  ;;  %v357_v52 = vand.u32 2147483647, %v347_v42  ;;  %vm353_vm2 = vweird.f32 %v347_v42 }
  0xb9   : > { %v337_v55 = vmul.f32 %v336_v50, %v324_v15  ;;  %v458_v15 = vld [vmem:[%s1009_s5 + $0x30] sm:$0xff] }
  0xba   : > { %v360_v54 = vor.u32 1.1754944e-38, %v359_v49  ;;  %vm358_vm4 = vcmp.eq.f32.partialorder %v357_v52, 8.507059e+37 }
  0xbe   : > { %v652_v45 = vpop.eup %651 }
  0xbf   : > { %v349_v47 = vmul.f32 %v652_v45, %v347_v42  ;;  %vm354_vm1 = vweird.f32 %v652_v45 }
  0xc0   : > { %vm355_vm3 = vmor %vm353_vm2, %vm354_vm1 }
  0xc1   : > { %v350_v48 = vsub.f32 1.0, %v349_v47 }
  0xc3   : > { %v351_v51 = vmul.f32 %v652_v45, %v350_v48 }
  0xc5   : > { %v352_v53 = vadd.f32 %v652_v45, %v351_v51 }
  0xc7   : > { %v356_v56 = vsel %vm355_vm3, %v652_v45, %v352_v53 }
  0xc8   : > { %v361_v57 = vsel %vm358_vm4, %v360_v54, %v356_v56 }
  0xc9   : > { %v362_v58 = vmul.f32 %v361_v57, %v337_v55  ;;  %v650_v57 = vld [vmem:[%s1010_s6] ss:$0 sm:$0xff] }
  0xcb   : > { %v590_v59 = vclamps-f32 %v362_v58, 1.0 }
  0xcd   : > { %v365_v60 = vmul.f32 0.5, %v590_v59 }
  0xcf   : > { %v366_v61 = vadd.f32 0.5, %v365_v60 }
  0xd1   : > { %v367_v62 = vmul.f32 %v366_v61, %v880_v13  ;;  %v459_v13 = vld [vmem:[%s1009_s5 + $0x38] sm:$0xff] }
  0xd2   : > { %480 = vmatpush.msra.mxu2 %v459_v13 }
  0xd3   : > { %404 = vmatmul.f32.vlgmr.msra.gmra.mxu1 %v367_v62 }
  0xd4   : > { %481 = vmatpush.msra.mxu2 %v458_v15 }
  0xd6   : > { %482 = vmatpush.msra.mxu2 %v457_v18 }
  0xd8   : > { %483 = vmatpush.msra.mxu2 %v456_v21 }
  0xda   : > { %484 = vmatpush.msra.mxu2 %v455_v23 }
  0xdc   : > { %485 = vmatpush.msra.mxu2 %v454_v26 }
  0xde   : > { %486 = vmatpush.msra.mxu2 %v453_v28 }
  0xe0   : > { %487 = vmatpush.msra.mxu2 %v452_v31 }
 0x150   : > { %v405_v5 = vpop.f32.mrf.mxu1 }
 0x151   : > { %v932_v6 = vadd.f32 %v649_v1, %v405_v5 }
 0x153   : > { %v408_v8 = vmul.f32 0.70710677, %v932_v6 }
 0x155   : > { %v409_v10 = vmul.f32 %v408_v8, %v408_v8 }
 0x157   : > { %v410_v12 = vmin.f32 %v409_v10, 16.0 }
 0x159   : > { %v411_v14 = vmul.f32 2.1237322e-06, %v410_v12  ;;  %v422_v16 = vmul.f32 3.8918573e-05, %v410_v12 }
 0x15b   : > { %v412_v17 = vadd.f32 0.00028619796, %v411_v14  ;;  %v423_v19 = vadd.f32 0.001143296, %v422_v16 }
 0x15d   : > { %v413_v20 = vmul.f32 %v412_v17, %v410_v12  ;;  %v424_v22 = vmul.f32 %v423_v19, %v410_v12 }
 0x15f   : > { %v425_v24 = vadd.f32 0.014752088, %v424_v22  ;;  %v414_v25 = vadd.f32 0.0036580483, %v413_v20 }
 0x161   : > { %v426_v27 = vmul.f32 %v425_v24, %v410_v12  ;;  %v415_v30 = vmul.f32 %v414_v25, %v410_v12 }
 0x163   : > { %v427_v29 = vadd.f32 0.112945676, %v426_v27  ;;  %v416_v34 = vadd.f32 0.05243302, %v415_v30 }
 0x165   : > { %v428_v32 = vmul.f32 %v427_v29, %v410_v12  ;;  %v417_v37 = vmul.f32 %v416_v34, %v410_v12 }
 0x167   : > { %v429_v33 = vadd.f32 0.4994258, %v428_v32  ;;  %v418_v38 = vadd.f32 0.18741608, %v417_v37 }
 0x169   : > { %v430_v35 = vmul.f32 %v429_v33, %v410_v12  ;;  %v419_v40 = vmul.f32 %v418_v38, %v410_v12 }
 0x16b   : > { %v431_v36 = vadd.f32 1.0, %v430_v35  ;;  %v420_v44 = vadd.f32 1.1283791, %v419_v40 }
 0x16d   : > { %653 = vrcp.f32 %v431_v36  ;;  %v443_v43 = vand.u32 2147483648, %v431_v36  ;;  %v441_v46 = vand.u32 2147483647, %v431_v36  ;;  %vm437_vm6 = vweird.f32 %v431_v36 }
 0x16e   : > { %v421_v49 = vmul.f32 %v420_v44, %v408_v8 }
 0x16f   : > { %v444_v48 = vor.u32 1.1754944e-38, %v443_v43  ;;  %vm442_vm8 = vcmp.eq.f32.partialorder %v441_v46, 8.507059e+37 }
 0x173   : > { %v654_v39 = vpop.eup %653 }
 0x174   : > { %v433_v41 = vmul.f32 %v654_v39, %v431_v36  ;;  %vm438_vm5 = vweird.f32 %v654_v39 }
 0x175   : > { %vm439_vm7 = vmor %vm437_vm6, %vm438_vm5 }
 0x176   : > { %v434_v42 = vsub.f32 1.0, %v433_v41 }
 0x178   : > { %v435_v45 = vmul.f32 %v654_v39, %v434_v42 }
 0x17a   : > { %v436_v47 = vadd.f32 %v654_v39, %v435_v45 }
 0x17c   : > { %v440_v50 = vsel %vm439_vm7, %v654_v39, %v436_v47 }
 0x17d   : > { %v445_v51 = vsel %vm442_vm8, %v444_v48, %v440_v50 }
 0x17e   : > { %v446_v52 = vmul.f32 %v445_v51, %v421_v49 }
 0x180   : > { %v591_v53 = vclamps-f32 %v446_v52, 1.0 }
 0x182   : > { %v449_v54 = vmul.f32 0.5, %v591_v53 }
 0x184   : > { %v450_v55 = vadd.f32 0.5, %v449_v54 }
 0x186   : > { %v451_v56 = vmul.f32 %v450_v55, %v932_v6 }
 0x188   : > { %488 = vmatmul.f32.vlgmr.msra.gmra.mxu2 %v451_v56 }
 0x20b   : > { %v489_v58 = vpop.f32.mrf.mxu2 }
 0x20c   : > { %v490_v59 = vadd.f32 %v650_v57, %v489_v58 }
 0x20e   : > { %493 = vst.msk [vmem:[%s286_s17] sm:$0xff] %vm492_vm9, %v490_v59 }
 0x20f   : > { %712 = shalt.err (!%p709_p8)
}
 0x210   : > { %600 = dma.vmem_to_hbm [thread:$0]  (%p834_p5), %s508_s18, 128, %s510_s19, %s495_s20  }
 0x211 PF: > { %p612_p9 = scmp.ge.s32.totalorder %s751_s27, 2  ;;  %s521_s23 = sand.u32 1, %s739_s24  }
 0x212   : > { %s522_s14 = scalar_lea.sflag [#allocation4], %s521_s23 }
 0x213   : > { %p607_p10 = pnand %p612_p9, %p838_p6 }
 0x215   : > { %p608_p11 = pneg %p607_p10 }
 0x217   : > { %734 = dma.done.wait (%p608_p11), %s522_s14, 128  }
 0x218   : > { %736 = vsyncadd (%p608_p11), %s522_s14, 4294967168  ;;  %p18_p12 = scmp.ge.s32.totalorder %s821_s30, 4   ;;  %s1014_s24 = smov %s743_s25 }
 0x219   : > { %s1015_s25 = smov %s747_s26  ;;  %s1016_s26 = smov %s832_s10 }
 0x21a   : > { %s1017_s27 = smov %s821_s30  ;;  %20 = sbr.rel (!%p18_p12) target bundleno = 4 (0x4), region = 88 }
 0x21f   :  { %528 = vsyncpa [#allocation3], 1 }
 0x220   :  { %530 = vsyncpa [#allocation3 + $0x1], 1 }
 0x221   :  { %531 = vsyncpa [#allocation4], 1 }
 0x222   :  { %533 = vsyncpa [#allocation4 + $0x1], 1 }

</bundles_post_ra>
